<compile_context>
chip_gen: v7x
topology: tpu7x:2x2x1
jax: 0.10.0
libtpu: 0.0.40
codegen_flags: <defaults>
</compile_context>

<pallas_src>
import functools

import jax
import jax.numpy as jnp
from jax.experimental import pallas as pl
from jax.experimental.pallas import tpu as pltpu


def _round_up(x, m):
    return ((x + m - 1) // m) * m


def _mlp_kernel(x_ref, wg_ref, wu_ref, wd_ref, o_ref, *scratch, acc_in_out):
    # grid = (M_tiles, I_tiles); intermediate (I) is the reduction axis -> last.
    j = pl.program_id(1)
    acc_ref = o_ref if acc_in_out else scratch[0]

    @pl.when(j == 0)
    def _():
        acc_ref[...] = jnp.zeros_like(acc_ref)

    x = x_ref[...]                                                     # (tm, H) compute dtype
    g = jnp.dot(x, wg_ref[...], preferred_element_type=jnp.float32)    # (tm, ti) f32
    u = jnp.dot(x, wu_ref[...], preferred_element_type=jnp.float32)    # (tm, ti) f32
    h = (g * jax.nn.sigmoid(g)) * u                                    # SiLU(gate) * up, f32
    acc_ref[...] += jnp.dot(h.astype(wd_ref.dtype), wd_ref[...],
                            preferred_element_type=jnp.float32)        # (tm, H) f32

    if not acc_in_out:
        @pl.when(j == pl.num_programs(1) - 1)
        def _():
            o_ref[...] = acc_ref[...].astype(o_ref.dtype)


def mlp_pallas(x, w_gate, w_up, w_down, *, tm=None, ti=None,
               compute_dtype=jnp.bfloat16):
    """SwiGLU MLP: (silu(x @ w_gate) * (x @ w_up)) @ w_down.

    Matmul operands are streamed to the MXU in `compute_dtype` (bf16 by
    default); accumulation is f32 and the output keeps x.dtype.
    """
    orig_shape = x.shape
    out_dtype = x.dtype
    H, I = w_gate.shape
    assert w_up.shape == (H, I) and w_down.shape == (I, H)

    x2 = x.reshape(-1, H)
    M = x2.shape[0]

    # In a real model the weights would already be stored in compute_dtype;
    # TODO(synk): hoist these weight casts out of the per-call path (load time).
    cdt = jnp.dtype(compute_dtype)
    x2 = x2.astype(cdt)
    wg = w_gate.astype(cdt)
    wu = w_up.astype(cdt)
    wd = w_down.astype(cdt)

    # ---- per-generation tile / VMEM selection -------------------------------
    try:
        kind = jax.devices()[0].device_kind.lower()
    except Exception:  # pragma: no cover
        kind = ""
    is_v7 = ("v7" in kind) or ("7x" in kind)
    is_v5 = "v5" in kind

    cdt_b = cdt.itemsize
    out_b = jnp.dtype(out_dtype).itemsize
    # min sublane tile keyed off the x/compute dtype and the output dtype
    sub = max(8, 32 // cdt_b, 32 // out_b)

    if tm is None:
        tm = 256 if is_v5 else 512
    if ti is None:
        ti = 512

    # VMEM budgets: v7x has 64 MiB per TensorCore, v5e/v6e have 128 MiB.
    budget = (44 if is_v7 else 88) * 1024 * 1024
    vmem_limit = (56 if is_v7 else 100) * 1024 * 1024

    # Keep both v7x TensorCores fed on the parallel M axis, but round the
    # halved tile to an MXU-friendly multiple of 256 (not the sublane).
    if is_v7 and M >= 512:
        tm = min(tm, _round_up(-(-M // 2), 256))

    tm = max(sub, _round_up(min(tm, _round_up(M, sub)), sub))
    ti = max(128, _round_up(min(ti, _round_up(I, 128)), 128))

    # f32 outputs double as the resident accumulator (no separate scratch).
    acc_in_out = jnp.dtype(out_dtype) == jnp.float32

    def footprint(tm_, ti_):
        w = 2 * (2 * H * ti_ + ti_ * H) * cdt_b     # gate/up/down tiles, double-buffered
        xo = 2 * tm_ * H * cdt_b + tm_ * H * out_b  # x tiles + resident output tile
        acc = 0 if acc_in_out else tm_ * H * 4      # f32 scratch accumulator
        return w + xo + acc

    while footprint(tm, ti) > budget and (ti > 256 or tm > sub):
        if ti > 256:
            ti = max(256, _round_up(ti // 2, 128))
        else:
            tm = max(sub, _round_up(tm // 2, sub))

    # Prefer a ti that divides I exactly (avoids padding the big weights),
    # but never drop below max(ti//2, 256): padding I once is cheaper than a
    # permanently tiny reduction tile.
    lo = max(ti // 2, 256)
    for cand in range(ti // 128, 0, -1):
        t = cand * 128
        if t < lo:
            break
        if I % t == 0:
            ti = t
            break

    # ---- pad token and intermediate dims to tile multiples ------------------
    M_pad = _round_up(M, tm)
    I_pad = _round_up(I, ti)
    if M_pad != M:
        x2 = jnp.pad(x2, ((0, M_pad - M), (0, 0)))
    if I_pad != I:
        # zero-padding the intermediate dim is exact: silu(0) * 0 == 0
        wg = jnp.pad(wg, ((0, 0), (0, I_pad - I)))
        wu = jnp.pad(wu, ((0, 0), (0, I_pad - I)))
        wd = jnp.pad(wd, ((0, I_pad - I), (0, 0)))

    n_i = I_pad // ti
    grid = (M_pad // tm, n_i)  # reduction axis (I) last

    scratch_shapes = [] if acc_in_out else [pltpu.VMEM((tm, H), jnp.float32)]

    out = pl.pallas_call(
        functools.partial(_mlp_kernel, acc_in_out=acc_in_out),
        out_shape=jax.ShapeDtypeStruct((M_pad, H), out_dtype),
        grid_spec=pltpu.PrefetchScalarGridSpec(
            num_scalar_prefetch=0,
            grid=grid,
            in_specs=[
                pl.BlockSpec((tm, H), lambda i, j: (i, 0)),   # x tile
                pl.BlockSpec((H, ti), lambda i, j: (0, j)),   # gate_proj tile
                pl.BlockSpec((H, ti), lambda i, j: (0, j)),   # up_proj tile
                pl.BlockSpec((ti, H), lambda i, j: (j, 0)),   # down_proj tile
            ],
            out_specs=pl.BlockSpec((tm, H), lambda i, j: (i, 0)),
            scratch_shapes=scratch_shapes,
        ),
        compiler_params=pltpu.CompilerParams(
            dimension_semantics=("parallel", "arbitrary"),
            vmem_limit_bytes=vmem_limit),
    )(x2, wg, wu, wd)

    if M_pad != M:
        out = out[:M]
    return out.reshape(orig_shape)


def mlp_reference(x, w_gate, w_up, w_down):
    x, w_gate, w_up, w_down = (a.astype(jnp.float32)
                               for a in (x, w_gate, w_up, w_down))
    g = x @ w_gate
    u = x @ w_up
    return (jax.nn.silu(g) * u) @ w_down


if __name__ == "__main__":
    key = jax.random.PRNGKey(0)

    # --- check 1: aligned config, bf16 compute (H=128, I=256, batch=2, seq=8)
    hidden_size, intermediate_size = 128, 256
    batch, seq = 2, 8
    k_x, k_g, k_u, k_d = jax.random.split(key, 4)
    x = jax.random.normal(k_x, (batch, seq, hidden_size), dtype=jnp.float32)
    w_gate = jax.random.normal(k_g, (hidden_size, intermediate_size), jnp.float32) * 0.02
    w_up = jax.random.normal(k_u, (hidden_size, intermediate_size), jnp.float32) * 0.02
    w_down = jax.random.normal(k_d, (intermediate_size, hidden_size), jnp.float32) * 0.02

    out = jax.block_until_ready(mlp_pallas(x, w_gate, w_up, w_down))
    ref = mlp_reference(x, w_gate, w_up, w_down)
    assert out.shape == (batch, seq, hidden_size)
    assert jnp.allclose(out, ref, atol=2e-3, rtol=5e-2), "mismatch vs reference (bf16, aligned)"

    # --- check 2: ragged config exercising M and I padding (seq=5, I=320) ----
    hidden_size2, intermediate_size2 = 128, 320
    batch2, seq2 = 2, 5
    k_x2, k_g2, k_u2, k_d2 = jax.random.split(jax.random.PRNGKey(1), 4)
    x2 = jax.random.normal(k_x2, (batch2, seq2, hidden_size2), dtype=jnp.float32)
    w_gate2 = jax.random.normal(k_g2, (hidden_size2, intermediate_size2), jnp.float32) * 0.02
    w_up2 = jax.random.normal(k_u2, (hidden_size2, intermediate_size2), jnp.float32) * 0.02
    w_down2 = jax.random.normal(k_d2, (intermediate_size2, hidden_size2), jnp.float32) * 0.02

    out2 = jax.block_until_ready(mlp_pallas(x2, w_gate2, w_up2, w_down2))
    ref2 = mlp_reference(x2, w_gate2, w_up2, w_down2)
    assert out2.shape == (batch2, seq2, hidden_size2)
    assert jnp.allclose(out2, ref2, atol=2e-3, rtol=5e-2), "mismatch vs reference (bf16, padded)"

    # --- check 3: exact f32 compute path (same data as check 1) --------------
    out3 = jax.block_until_ready(
        mlp_pallas(x, w_gate, w_up, w_down, compute_dtype=jnp.float32))
    assert jnp.allclose(out3, ref, atol=3e-4, rtol=1e-3), "mismatch vs reference (f32)"

    # --- check 4: bf16 in/out, multi-step reduction + scratch accumulator ----
    hidden_size4, intermediate_size4 = 128, 1024
    batch4, seq4 = 2, 16
    k_x4, k_g4, k_u4, k_d4 = jax.random.split(jax.random.PRNGKey(2), 4)
    x4 = jax.random.normal(k_x4, (batch4, seq4, hidden_size4), jnp.float32).astype(jnp.bfloat16)
    w_gate4 = (jax.random.normal(k_g4, (hidden_size4, intermediate_size4), jnp.float32) * 0.02).astype(jnp.bfloat16)
    w_up4 = (jax.random.normal(k_u4, (hidden_size4, intermediate_size4), jnp.float32) * 0.02).astype(jnp.bfloat16)
    w_down4 = (jax.random.normal(k_d4, (intermediate_size4, hidden_size4), jnp.float32) * 0.02).astype(jnp.bfloat16)

    # tm=16 forces multiple token tiles; I=1024 with ti=512 forces 2 reduction steps.
    out4 = jax.block_until_ready(mlp_pallas(x4, w_gate4, w_up4, w_down4, tm=16))
    ref4 = mlp_reference(x4, w_gate4, w_up4, w_down4)
    assert out4.shape == (batch4, seq4, hidden_size4)
    assert out4.dtype == jnp.bfloat16
    assert jnp.allclose(out4.astype(jnp.float32), ref4, atol=3e-3, rtol=6e-2), \
        "mismatch vs reference (bf16 io, multi-step)"

    print("KERNEL_OK")
</pallas_src>

<mosaic_0001>
module attributes {stable_mosaic.version = 11 : i64} {
  func.func @_mlp_kernel(%arg0: i32, %arg1: i32, %arg2: memref<16x128xbf16, #tpu.memory_space<vmem>>, %arg3: memref<128x256xbf16, #tpu.memory_space<vmem>>, %arg4: memref<128x256xbf16, #tpu.memory_space<vmem>>, %arg5: memref<256x128xbf16, #tpu.memory_space<vmem>>, %arg6: memref<16x128xf32, #tpu.memory_space<vmem>>) attributes {dimension_semantics = [#tpu.dimension_semantics<parallel>, #tpu.dimension_semantics<arbitrary>], iteration_bounds = array<i64: 1, 1>, scalar_prefetch = 0 : i64, scratch_operands = 0 : i64, tpu.core_type = #tpu.core_type<tc>, window_params = [{transform_indices = @transform_0, window_bounds = array<i64: 16, 128>}, {transform_indices = @transform_1, window_bounds = array<i64: 128, 256>}, {transform_indices = @transform_2, window_bounds = array<i64: 128, 256>}, {transform_indices = @transform_3, window_bounds = array<i64: 256, 128>}, {transform_indices = @transform_4, window_bounds = array<i64: 16, 128>}]} {
    %c0_i32 = arith.constant 0 : i32
    %0 = arith.cmpi eq, %arg1, %c0_i32 : i32
    %1 = arith.extui %0 : i1 to i32
    %c0_i32_0 = arith.constant 0 : i32
    %2 = arith.cmpi ne, %1, %c0_i32_0 : i32
    scf.if %2 {
      %cst_15 = arith.constant 0.000000e+00 : f32
      %21 = vector.broadcast %cst_15 : f32 to vector<16x128xf32>
      %c0_16 = arith.constant 0 : index
      %c0_17 = arith.constant 0 : index
      %22 = vector.load %arg6[%c0_16, %c0_17] : memref<16x128xf32, #tpu.memory_space<vmem>>, vector<16x128xf32>
      tpu.vector_store %arg6[%c0_16, %c0_17], %21 {strides = array<i32>} : memref<16x128xf32, #tpu.memory_space<vmem>>, vector<16x128xf32>,
    } else {
    }
    %c0 = arith.constant 0 : index
    %c0_1 = arith.constant 0 : index
    %3 = vector.load %arg2[%c0, %c0_1] : memref<16x128xbf16, #tpu.memory_space<vmem>>, vector<16x128xbf16>
    %c0_2 = arith.constant 0 : index
    %c0_3 = arith.constant 0 : index
    %4 = vector.load %arg3[%c0_2, %c0_3] : memref<128x256xbf16, #tpu.memory_space<vmem>>, vector<128x256xbf16>
    %cst = arith.constant dense<0.000000e+00> : vector<16x256xf32>
    %5 = tpu.matmul %3, %4, %cst {dimension_numbers = #tpu.dot_dimension_numbers<[1], [0], [0], [1], [0, 0, 1, 1], [], []>} : vector<16x128xbf16>, vector<128x256xbf16>, vector<16x256xf32> -> vector<16x256xf32>
    %c0_4 = arith.constant 0 : index
    %c0_5 = arith.constant 0 : index
    %6 = vector.load %arg4[%c0_4, %c0_5] : memref<128x256xbf16, #tpu.memory_space<vmem>>, vector<128x256xbf16>
    %cst_6 = arith.constant dense<0.000000e+00> : vector<16x256xf32>
    %7 = tpu.matmul %3, %6, %cst_6 {dimension_numbers = #tpu.dot_dimension_numbers<[1], [0], [0], [1], [0, 0, 1, 1], [], []>} : vector<16x128xbf16>, vector<128x256xbf16>, vector<16x256xf32> -> vector<16x256xf32>
    %8 = arith.negf %5 : vector<16x256xf32>
    %9 = math.exp %8 : vector<16x256xf32>
    %cst_7 = arith.constant 1.000000e+00 : f32
    %10 = vector.broadcast %cst_7 : f32 to vector<16x256xf32>
    %11 = arith.addf %10, %9 : vector<16x256xf32>
    %12 = arith.divf %10, %11 : vector<16x256xf32>
    %13 = arith.mulf %5, %12 : vector<16x256xf32>
    %14 = arith.mulf %13, %7 : vector<16x256xf32>
    %c0_8 = arith.constant 0 : index
    %c0_9 = arith.constant 0 : index
    %15 = vector.load %arg6[%c0_8, %c0_9] : memref<16x128xf32, #tpu.memory_space<vmem>>, vector<16x128xf32>
    %16 = arith.truncf %14 : vector<16x256xf32> to vector<16x256xbf16>
    %c0_10 = arith.constant 0 : index
    %c0_11 = arith.constant 0 : index
    %17 = vector.load %arg5[%c0_10, %c0_11] : memref<256x128xbf16, #tpu.memory_space<vmem>>, vector<256x128xbf16>
    %cst_12 = arith.constant dense<0.000000e+00> : vector<16x128xf32>
    %18 = tpu.matmul %16, %17, %cst_12 {dimension_numbers = #tpu.dot_dimension_numbers<[1], [0], [0], [1], [0, 0, 1, 1], [], []>} : vector<16x256xbf16>, vector<256x128xbf16>, vector<16x128xf32> -> vector<16x128xf32>
    %19 = arith.addf %15, %18 : vector<16x128xf32>
    %c0_13 = arith.constant 0 : index
    %c0_14 = arith.constant 0 : index
    %20 = vector.load %arg6[%c0_13, %c0_14] : memref<16x128xf32, #tpu.memory_space<vmem>>, vector<16x128xf32>
    tpu.vector_store %arg6[%c0_13, %c0_14], %19 {strides = array<i32>} : memref<16x128xf32, #tpu.memory_space<vmem>>, vector<16x128xf32>,
    return
  }
  func.func @transform_0(%arg0: i32, %arg1: i32) -> (i32, i32) {
    %c0_i32 = arith.constant 0 : i32
    %c0_i32_0 = arith.constant 0 : i32
    return %arg0, %c0_i32 : i32, i32
  }
  func.func @transform_1(%arg0: i32, %arg1: i32) -> (i32, i32) {
    %c0_i32 = arith.constant 0 : i32
    %c0_i32_0 = arith.constant 0 : i32
    return %c0_i32, %arg1 : i32, i32
  }
  func.func @transform_2(%arg0: i32, %arg1: i32) -> (i32, i32) {
    %c0_i32 = arith.constant 0 : i32
    %c0_i32_0 = arith.constant 0 : i32
    return %c0_i32, %arg1 : i32, i32
  }
  func.func @transform_3(%arg0: i32, %arg1: i32) -> (i32, i32) {
    %c0_i32 = arith.constant 0 : i32
    %c0_i32_0 = arith.constant 0 : i32
    return %arg1, %c0_i32 : i32, i32
  }
  func.func @transform_4(%arg0: i32, %arg1: i32) -> (i32, i32) {
    %c0_i32 = arith.constant 0 : i32
    %c0_i32_0 = arith.constant 0 : i32
    return %arg0, %c0_i32 : i32, i32
  }
}

</mosaic_0001>

<bundles_post_ra>
// kernel: tpu_custom_call.1
= control target key start
LH: loop header
LB: loop body
LE: loop exit
PB: predicated region body
PF: predicated region fallthrough
CT: control target
= control target key end

     0   :  { %9 = vsyncpa [#allocation3], 0  ;;  %s996_s0 = inlined_call_operand.hbm [shape: bf16[16,128], index: 0, kind: input, shape index: {}]   ;;  %s997_s1 = inlined_call_operand.hbm [shape: bf16[128,256], index: 1, kind: input, shape index: {}]   ;;  %s998_s2 = inlined_call_operand.hbm [shape: bf16[128,256], index: 2, kind: input, shape index: {}]   ;;  %s999_s3 = inlined_call_operand.hbm [shape: bf16[256,128], index: 3, kind: input, shape index: {}]   ;;  %s1000_s4 = inlined_call_operand.hbm [shape: f32[16,128], index: 4, kind: output, shape index: {}]  }
   0x1   :  { %10 = vsyncpa [#allocation6], 0 }
   0x2   :  { %11 = vsyncpa [#allocation9], 0 }
   0x3   :  { %12 = vsyncpa [#allocation4], 0  ;;  %s879_s15 = smov [#allocation5]   ;;  %s761_s19 = scalar_lea.hbm %s997_s1, 2048 }
   0x4   :  { %s30_s16 = sshll.u32 %s879_s15, 4  ;;  %p762_p0 = scmp.ne.s32.totalorder %s997_s1, %s761_s19  ;;  %s31_s16 = int_to_ptr.vmem [resolvable:$true] %s30_s16 }
   0x5   :  { %p765_p1 = scmp.lt.u32.totalorder %s761_s19, %s997_s1 }
   0x7   :  { %p767_p2 = pnand %p765_p1, %p762_p0 }
   0x9   :  { %770 = shalt.err (!%p767_p2)
}
   0xa   :  { %s771_s24 = scalar_lea.vmem %s31_s16, 2048  ;;  %p776_p4 = scmp.lt.s32.totalorder %s31_s16, %s31_s16 }
   0xb   :  { %p772_p3 = scmp.ne.s32.totalorder %s31_s16, %s771_s24  ;;  %p777_p5 = scmp.lt.s32.totalorder %s771_s24, %s771_s24 }
   0xd   :  { %p778_p6 = por %p777_p5, %p776_p4 }
   0xf   :  { %p779_p7 = pnand %p778_p6, %p772_p3 }
  0x11   :  { %782 = shalt.err (!%p779_p7)
}
  0x12   :  { %s880_s25 = smov 128   ;;  %s881_s26 = smov 8  }
  0x13   :  { %36 = dma.hbm_to_vmem [thread:$0]  %s997_s1, 2048, %s31_s16, [#allocation6], %s880_s25, %s880_s25, %s881_s26  }
  0x14   :  { %s882_s29 = smov [#allocation2]   ;;  %s783_s7 = scalar_lea.hbm %s996_s0, 128 }
  0x15   :  { %s18_s30 = sshll.u32 %s882_s29, 4  ;;  %p784_p8 = scmp.ne.s32.totalorder %s996_s0, %s783_s7  ;;  %s19_s30 = int_to_ptr.vmem [resolvable:$true] %s18_s30 }
  0x16   :  { %p787_p9 = scmp.lt.u32.totalorder %s783_s7, %s996_s0 }
  0x18   :  { %p789_p10 = pnand %p787_p9, %p784_p8 }
  0x1a   :  { %792 = shalt.err (!%p789_p10)
}
  0x1b   :  { %s793_s12 = scalar_lea.vmem %s19_s30, 128  ;;  %p798_p12 = scmp.lt.s32.totalorder %s19_s30, %s19_s30 }
  0x1c   :  { %p794_p11 = scmp.ne.s32.totalorder %s19_s30, %s793_s12  ;;  %p799_p13 = scmp.lt.s32.totalorder %s793_s12, %s793_s12 }
  0x1e   :  { %p800_p0 = por %p799_p13, %p798_p12 }
  0x20   :  { %p801_p1 = pnand %p800_p0, %p794_p11 }
  0x22   :  { %804 = shalt.err (!%p801_p1)
}
  0x23   :  { %s883_s1 = smov 64   ;;  %s884_s13 = smov 4  }
  0x24   :  { %24 = dma.hbm_to_vmem [thread:$0]  %s996_s0, 128, %s19_s30, [#allocation3], %s883_s1, %s883_s1, %s884_s13  }
  0x25   :  { %s885_s16 = smov [#allocation7]   ;;  %s886_s18 = smov [#allocation8]  }
  0x26   :  { %s42_s17 = sshll.u32 %s885_s16, 4  ;;  %s54_s19 = sshll.u32 %s886_s18, 4  ;;  %s43_s17 = int_to_ptr.vmem [resolvable:$true] %s42_s17  ;;  %s944_s19 = int_to_ptr.vmem [resolvable:$true] %s54_s19 }
  0x27   :  { %s805_s22 = scalar_lea.hbm %s998_s2, 2048 }
  0x28   :  { %p806_p2 = scmp.ne.s32.totalorder %s998_s2, %s805_s22  ;;  %p809_p3 = scmp.lt.u32.totalorder %s805_s22, %s998_s2 }
  0x2a   :  { %p811_p4 = pnand %p809_p3, %p806_p2 }
  0x2c   :  { %814 = shalt.err (!%p811_p4)
}
  0x2d   :  { %s815_s0 = scalar_lea.vmem %s43_s17, 2048  ;;  %p820_p6 = scmp.lt.s32.totalorder %s43_s17, %s43_s17 }
  0x2e   :  { %p816_p5 = scmp.ne.s32.totalorder %s43_s17, %s815_s0  ;;  %p821_p7 = scmp.lt.s32.totalorder %s815_s0, %s815_s0 }
  0x30   :  { %p822_p8 = por %p821_p7, %p820_p6 }
  0x32   :  { %p823_p9 = pnand %p822_p8, %p816_p5 }
  0x34   :  { %826 = shalt.err (!%p823_p9)
}
  0x35   :  { %48 = dma.hbm_to_vmem [thread:$0]  %s998_s2, 2048, %s43_s17, [#allocation6], %s880_s25, %s880_s25, %s881_s26  }
  0x36   :  { %s827_s7 = scalar_lea.hbm %s999_s3, 2048 }
  0x37   :  { %p828_p10 = scmp.ne.s32.totalorder %s999_s3, %s827_s7  ;;  %p831_p11 = scmp.lt.u32.totalorder %s827_s7, %s999_s3 }
  0x39   :  { %p833_p12 = pnand %p831_p11, %p828_p10 }
  0x3b   :  { %836 = shalt.err (!%p833_p12)
}
  0x3c   :  { %s837_s12 = scalar_lea.vmem %s944_s19, 2048  ;;  %p842_p0 = scmp.lt.s32.totalorder %s944_s19, %s944_s19 }
  0x3d   :  { %p838_p13 = scmp.ne.s32.totalorder %s944_s19, %s837_s12  ;;  %p843_p1 = scmp.lt.s32.totalorder %s837_s12, %s837_s12 }
  0x3f   :  { %p844_p2 = por %p843_p1, %p842_p0 }
  0x41   :  { %p845_p3 = pnand %p844_p2, %p838_p13 }
  0x43   :  { %848 = shalt.err (!%p845_p3)
}
  0x44   :  { %60 = dma.hbm_to_vmem [thread:$0]  %s999_s3, 2048, %s944_s19, [#allocation9], %s883_s1, %s883_s1, %s884_s13  }
  0x45   :  { %871 = dma.done.wait [#allocation3], 128  }
  0x46   :  { %872 = vsyncadd [#allocation3], 4294967168 }
  0x47   :  { %873 = dma.done.wait [#allocation6], 4096  }
  0x48   :  { %874 = vsyncadd [#allocation6], 4294963200 }
  0x49   :  { %875 = dma.done.wait [#allocation9], 2048  }
  0x4a   :  { %876 = vsyncadd [#allocation9], 4294965248  ;;  %v887_v0 = vmov 0   ;;  %v680_v1 = vld [vmem:[#allocation5 + $0x4] ss:$8 sps:$4 sm:$0xff]   ;;  %v710_v29 = vld [vmem:[#allocation2] sm:$0xff]  }
  0x4b   :  { %216 = vmatprep.mubr.bf16.mxu0 %v887_v0  ;;  %355 = vmatprep.mubr.bf16.mxu1 %v887_v0  ;;  %v682_v2 = vld [vmem:[#allocation5] ss:$8 sps:$4 sm:$0xff]   ;;  %v683_v3 = vld [vmem:[#allocation5 + $0x14] ss:$8 sps:$4 sm:$0xff]   ;;  %v685_v4 = vld [vmem:[#allocation5 + $0x10] ss:$8 sps:$4 sm:$0xff]  }
  0x4c   :  { %184 = vmatprep.subr.bf16.mxu0 %v680_v1  ;;  %v686_v5 = vld [vmem:[#allocation5 + $0x24] ss:$8 sps:$4 sm:$0xff]   ;;  %v688_v6 = vld [vmem:[#allocation5 + $0x20] ss:$8 sps:$4 sm:$0xff]   ;;  %v689_v7 = vld [vmem:[#allocation5 + $0x34] ss:$8 sps:$4 sm:$0xff]  }
  0x4d   :  { %185 = vmatpush1.bf16.msra.mxu0 %v682_v2  ;;  %v701_v8 = vld [vmem:[#allocation7 + $0x4] ss:$8 sps:$4 sm:$0xff]   ;;  %v703_v9 = vld [vmem:[#allocation7] ss:$8 sps:$4 sm:$0xff]   ;;  %v691_v10 = vld [vmem:[#allocation5 + $0x30] ss:$8 sps:$4 sm:$0xff]  }
  0x4e   :  { %186 = vmatprep.subr.bf16.mxu0 %v683_v3  ;;  %v692_v11 = vld [vmem:[#allocation5 + $0x44] ss:$8 sps:$4 sm:$0xff]   ;;  %323 = vmatprep.subr.bf16.mxu1 %v701_v8  ;;  %v707_v12 = vld [vmem:[#allocation7 + $0x14] ss:$8 sps:$4 sm:$0xff]   ;;  %v709_v13 = vld [vmem:[#allocation7 + $0x10] ss:$8 sps:$4 sm:$0xff]  }
  0x4f   :  { %324 = vmatpush1.bf16.msra.mxu1 %v703_v9  ;;  %v694_v14 = vld [vmem:[#allocation5 + $0x40] ss:$8 sps:$4 sm:$0xff]   ;;  %v711_v15 = vld [vmem:[#allocation7 + $0x24] ss:$8 sps:$4 sm:$0xff]   ;;  %v695_v16 = vld [vmem:[#allocation5 + $0x54] ss:$8 sps:$4 sm:$0xff]  }
  0x50   :  { %325 = vmatprep.subr.bf16.mxu1 %v707_v12  ;;  %v713_v17 = vld [vmem:[#allocation7 + $0x20] ss:$8 sps:$4 sm:$0xff]   ;;  %v714_v18 = vld [vmem:[#allocation7 + $0x34] ss:$8 sps:$4 sm:$0xff]   ;;  %v697_v19 = vld [vmem:[#allocation5 + $0x50] ss:$8 sps:$4 sm:$0xff]  }
  0x51   :  { %187 = vmatpush1.bf16.msra.mxu0 %v685_v4  ;;  %v698_v20 = vld [vmem:[#allocation5 + $0x64] ss:$8 sps:$4 sm:$0xff]   ;;  %v700_v21 = vld [vmem:[#allocation5 + $0x60] ss:$8 sps:$4 sm:$0xff]   ;;  %v716_v22 = vld [vmem:[#allocation7 + $0x30] ss:$8 sps:$4 sm:$0xff]  }
  0x52   :  { %188 = vmatprep.subr.bf16.mxu0 %v686_v5  ;;  %v704_v23 = vld [vmem:[#allocation5 + $0x74] ss:$8 sps:$4 sm:$0xff]   ;;  %v717_v24 = vld [vmem:[#allocation7 + $0x44] ss:$8 sps:$4 sm:$0xff]   ;;  %v719_v25 = vld [vmem:[#allocation7 + $0x40] ss:$8 sps:$4 sm:$0xff]  }
  0x53   :  { %326 = vmatpush1.bf16.msra.mxu1 %v709_v13  ;;  %v720_v26 = vld [vmem:[#allocation7 + $0x54] ss:$8 sps:$4 sm:$0xff]   ;;  %v706_v27 = vld [vmem:[#allocation5 + $0x70] ss:$8 sps:$4 sm:$0xff]   ;;  %v723_v30 = vld [vmem:[#allocation7 + $0x64] ss:$8 sps:$4 sm:$0xff]  }
  0x54   :  { %327 = vmatprep.subr.bf16.mxu1 %v711_v15  ;;  %v722_v28 = vld [vmem:[#allocation7 + $0x50] ss:$8 sps:$4 sm:$0xff]   ;;  %v725_v31 = vld [vmem:[#allocation7 + $0x60] ss:$8 sps:$4 sm:$0xff]   ;;  %v726_v32 = vld [vmem:[#allocation7 + $0x74] ss:$8 sps:$4 sm:$0xff]  }
  0x55   :  { %189 = vmatpush1.bf16.msra.mxu0 %v688_v6  ;;  %v728_v33 = vld [vmem:[#allocation7 + $0x70] ss:$8 sps:$4 sm:$0xff]   ;;  %v729_v34 = vld [vmem:[#allocation8 + $0x40] sm:$0xff]   ;;  %v731_v36 = vld [vmem:[#allocation8 + $0x48] sm:$0xff]   ;;  %s888_s3 = smov [#allocation10]  }
  0x56   :  { %190 = vmatprep.subr.bf16.mxu0 %v689_v7  ;;  %v730_v35 = vld [vmem:[#allocation8] sm:$0xff]   ;;  %v732_v37 = vld [vmem:[#allocation8 + $0x8] sm:$0xff]   ;;  %v733_v38 = vld [vmem:[#allocation8 + $0x50] sm:$0xff]   ;;  %s580_s1 = sshll.u32 %s888_s3, 4  ;;  %s581_s1 = int_to_ptr.vmem [resolvable:$true] %s580_s1 }
  0x57   :  { %328 = vmatpush1.bf16.msra.mxu1 %v713_v17  ;;  %v734_v39 = vld [vmem:[#allocation8 + $0x10] sm:$0xff]   ;;  %v735_v40 = vld [vmem:[#allocation8 + $0x58] sm:$0xff]   ;;  %v737_v42 = vld [vmem:[#allocation8 + $0x60] sm:$0xff]   ;;  %s849_s13 = scalar_lea.vmem %s581_s1, 256  ;;  %p854_p5 = scmp.lt.s32.totalorder %s581_s1, %s581_s1 }
  0x58   :  { %329 = vmatprep.subr.bf16.mxu1 %v714_v18  ;;  %v736_v41 = vld [vmem:[#allocation8 + $0x18] sm:$0xff]   ;;  %v738_v43 = vld [vmem:[#allocation8 + $0x20] sm:$0xff]   ;;  %v739_v44 = vld [vmem:[#allocation8 + $0x68] sm:$0xff]   ;;  %p850_p4 = scmp.ne.s32.totalorder %s581_s1, %s849_s13  ;;  %p855_p6 = scmp.lt.s32.totalorder %s849_s13, %s849_s13 }
  0x59   :  { %191 = vmatpush1.bf16.msra.mxu0 %v691_v10  ;;  %v740_v45 = vld [vmem:[#allocation8 + $0x28] sm:$0xff]   ;;  %v741_v46 = vld [vmem:[#allocation8 + $0x70] sm:$0xff]   ;;  %v743_v48 = vld [vmem:[#allocation8 + $0x78] sm:$0xff]  }
  0x5a   :  { %192 = vmatprep.subr.bf16.mxu0 %v692_v11  ;;  %v742_v47 = vld [vmem:[#allocation8 + $0x30] sm:$0xff]   ;;  %v744_v49 = vld [vmem:[#allocation8 + $0x38] sm:$0xff]   ;;  %p856_p7 = por %p855_p6, %p854_p5 }
  0x5b   :  { %330 = vmatpush1.bf16.msra.mxu1 %v716_v22 }
  0x5c   :  { %331 = vmatprep.subr.bf16.mxu1 %v717_v24  ;;  %p857_p8 = pnand %p856_p7, %p850_p4 }
  0x5d   :  { %193 = vmatpush1.bf16.msra.mxu0 %v694_v14 }
  0x5e   :  { %194 = vmatprep.subr.bf16.mxu0 %v695_v16 }
  0x5f   :  { %332 = vmatpush1.bf16.msra.mxu1 %v719_v25 }
  0x60   :  { %333 = vmatprep.subr.bf16.mxu1 %v720_v26 }
  0x61   :  { %195 = vmatpush1.bf16.msra.mxu0 %v697_v19 }
  0x62   :  { %196 = vmatprep.subr.bf16.mxu0 %v698_v20 }
  0x63   :  { %334 = vmatpush1.bf16.msra.mxu1 %v722_v28 }
  0x64   :  { %335 = vmatprep.subr.bf16.mxu1 %v723_v30 }
  0x65   :  { %197 = vmatpush1.bf16.msra.mxu0 %v700_v21 }
  0x66   :  { %198 = vmatprep.subr.bf16.mxu0 %v704_v23 }
  0x67   :  { %336 = vmatpush1.bf16.msra.mxu1 %v725_v31 }
  0x68   :  { %337 = vmatprep.subr.bf16.mxu1 %v726_v32 }
  0x69   :  { %199 = vmatpush1.bf16.msra.mxu0 %v706_v27 }
  0x6a   :  { %647 = vmatprep.subr.bf16.mxu0 %v729_v34 }
  0x6b   :  { %338 = vmatpush1.bf16.msra.mxu1 %v728_v33 }
  0x6c   :  { %217 = vmatmul.mubr.bf16.vlgmr.msra.gmra.mrb[0].mxu0 %v710_v29 }
  0x6d   :  { %648 = vmatpush3.bf16.msra.mxu0 %v730_v35 }
  0x6e   :  { %356 = vmatmul.mubr.bf16.vlgmr.msra.gmra.mrb[0].mxu1 %v710_v29  ;;  %649 = vmatprep.subr.bf16.mxu0 %v731_v36 }
  0x71   :  { %650 = vmatpush3.bf16.msra.mxu0 %v732_v37 }
  0x72   :  { %651 = vmatprep.subr.bf16.mxu0 %v733_v38 }
  0x75   :  { %652 = vmatpush3.bf16.msra.mxu0 %v734_v39 }
  0x76   :  { %653 = vmatprep.subr.bf16.mxu0 %v735_v40 }
  0x79   :  { %654 = vmatpush3.bf16.msra.mxu0 %v736_v41 }
  0x7a   :  { %655 = vmatprep.subr.bf16.mxu0 %v737_v42 }
  0x7d   :  { %656 = vmatpush3.bf16.msra.mxu0 %v738_v43 }
  0x7e   :  { %657 = vmatprep.subr.bf16.mxu0 %v739_v44 }
  0x81   :  { %658 = vmatpush3.bf16.msra.mxu0 %v740_v45 }
  0x82   :  { %659 = vmatprep.subr.bf16.mxu0 %v741_v46 }
  0x85   :  { %660 = vmatpush3.bf16.msra.mxu0 %v742_v47 }
  0x86   :  { %661 = vmatprep.subr.bf16.mxu0 %v743_v48 }
  0x89   :  { %662 = vmatpush3.bf16.msra.mxu0 %v744_v49 }
 0x13f   :  { %v218_v50 = vpop.f32.mrb[0].mxu0 }
 0x140   :  { %v627_v51 = vmul.f32 -1.442695, %v218_v50  ;;  %v220_v52 = vpop.f32.mrb[1].mxu0 }
 0x141   :  { %v628_v53 = vmul.f32 -1.442695, %v220_v52  ;;  %v222_v54 = vpop.f32.mrb[2].mxu0  ;;  %v357_v58 = vpop.f32.mrb[0].mxu1 }
 0x142   :  { %745 = vpow2.f32 %v627_v51  ;;  %v629_v55 = vmul.f32 -1.442695, %v222_v54  ;;  %v224_v56 = vpop.f32.mrb[3].mxu0  ;;  %v359_v59 = vpop.f32.mrb[1].mxu1 }
 0x143   :  { %747 = vpow2.f32 %v628_v53  ;;  %v630_v57 = vmul.f32 -1.442695, %v224_v56  ;;  %v361_v60 = vpop.f32.mrb[2].mxu1 }
 0x144   :  { %749 = vpow2.f32 %v629_v55  ;;  %v363_v62 = vpop.f32.mrb[3].mxu1 }
 0x145   :  { %751 = vpow2.f32 %v630_v57 }
 0x14c   :  { %v746_v61 = vpop.eup %745 }
 0x14d   :  { %v748_v63 = vpop.eup %747  ;;  %v378_v0 = vadd.f32 1.0, %v746_v61 }
 0x14e   :  { %v750_v1 = vpop.eup %749  ;;  %v379_v2 = vadd.f32 1.0, %v748_v63 }
 0x14f   :  { %v752_v3 = vpop.eup %751  ;;  %753 = vrcp.f32 %v378_v0  ;;  %v380_v4 = vadd.f32 1.0, %v750_v1 }
 0x150   :  { %755 = vrcp.f32 %v379_v2  ;;  %v381_v5 = vadd.f32 1.0, %v752_v3 }
 0x151   :  { %757 = vrcp.f32 %v380_v4 }
 0x152   :  { %759 = vrcp.f32 %v381_v5 }
 0x159   :  { %v754_v6 = vpop.eup %753 }
 0x15a   :  { %v756_v7 = vpop.eup %755  ;;  %v390_v8 = vmul.f32 %v754_v6, %v218_v50 }
 0x15b   :  { %v758_v9 = vpop.eup %757  ;;  %v391_v10 = vmul.f32 %v756_v7, %v220_v52 }
 0x15c   :  { %v760_v11 = vpop.eup %759  ;;  %v392_v12 = vmul.f32 %v758_v9, %v222_v54  ;;  %v394_v13 = vmul.f32 %v390_v8, %v357_v58 }
 0x15d   :  { %v393_v14 = vmul.f32 %v760_v11, %v224_v56  ;;  %v395_v15 = vmul.f32 %v391_v10, %v359_v59 }
 0x15e   :  { %v396_v16 = vmul.f32 %v392_v12, %v361_v60 }
 0x15f   :  { %v397_v17 = vmul.f32 %v393_v14, %v363_v62 }
 0x160   :  { %v400_v18 = vpack.c.bf16 %v396_v16, %v394_v13 }
 0x161   :  { %v401_v19 = vpack.c.bf16 %v397_v17, %v395_v15 }
 0x163   :  { %562 = vmatprep.mubr.bf16.mxu0 %v401_v19 }
 0x164   :  { %563 = vmatmul.mubr.bf16.vlgmr.msra.gmra.mrb[4].mxu0 %v400_v18 }
 0x237   :  { %v663_v20 = vpop.f32.mrb[4].mxu0 }
 0x238   :  { %v664_v21 = vpop.f32.mrb[5].mxu0 }
 0x239   :  { %v665_v22 = vadd.f32 %v664_v21, %v663_v20  ;;  %v666_v23 = vpop.f32.mrb[6].mxu0 }
 0x23a   :  { %v667_v24 = vpop.f32.mrb[7].mxu0 }
 0x23b   :  { %v668_v25 = vadd.f32 %v667_v24, %v666_v23  ;;  %573 = vst [vmem:[#allocation10] sm:$0xff] %v665_v22 }
 0x23d   :  { %574 = vst [vmem:[#allocation10 + $0x8] sm:$0xff] %v668_v25 }
 0x23e   :  { %860 = shalt.err (!%p857_p8)
}
 0x23f   :  { %s861_s17 = scalar_lea.hbm %s1000_s4, 256 }
 0x240   :  { %p862_p9 = scmp.ne.s32.totalorder %s1000_s4, %s861_s17  ;;  %p865_p10 = scmp.lt.u32.totalorder %s861_s17, %s1000_s4 }
 0x242   :  { %p867_p11 = pnand %p865_p10, %p862_p9 }
 0x244   :  { %870 = shalt.err (!%p867_p11)
}
 0x245   :  { %586 = dma.vmem_to_hbm [thread:$0]  %s581_s1, 256, %s1000_s4, [#allocation4], %s880_s25, %s880_s25, %s881_s26  }
 0x246   :  { %877 = dma.done.wait [#allocation4], 256  }
 0x247   :  { %878 = vsyncadd [#allocation4], 4294967040 }
 0x248   :  { %590 = vsyncpa [#allocation3], 1 }
 0x249   :  { %591 = vsyncpa [#allocation6], 1 }
 0x24a   :  { %592 = vsyncpa [#allocation9], 1 }
 0x24b   :  { %593 = vsyncpa [#allocation4], 1 }

</bundles_post_ra>
